<compile_context>
chip_gen: v6e
topology: v6e:2x2x1
jax: 0.10.0
libtpu: 0.0.40
codegen_flags: <defaults>
</compile_context>

<pallas_src>
import jax
import jax.numpy as jnp
from jax.experimental import pallas as pl
from jax.experimental.pallas import tpu as pltpu


def _pick_hw_tile(hw, c, itemsize, budget_bytes=4 * 1024 * 1024, max_tile=2048):
    """Largest 128-multiple lane tile whose (1, C, tile) block fits the budget."""
    hw_pad = ((hw + 127) // 128) * 128
    by_budget = max(128, (budget_bytes // max(c * itemsize, 1)) // 128 * 128)
    return int(min(hw_pad, by_budget, max_tile))


def _make_kernel(hw_total, hw_tile, needs_mask):
    inv_hw = 1.0 / float(hw_total)

    def kernel(x_ref, w1t_ref, w2t_ref, o_ref, sum_acc, max_acc):
        # x_ref:   (1, C, hw_tile)  native dtype (f32 / bf16 / ...)
        # w1t_ref: (C, Cr) f32      fc1 weight, pre-transposed
        # w2t_ref: (Cr, C) f32      fc2 weight, pre-transposed
        # o_ref:   (1, 1, C)        output block for this batch element
        # sum_acc / max_acc: (1, C) f32 scratch accumulators
        k = pl.program_id(1)

        xf = x_ref[...].astype(jnp.float32)           # reduce in f32 always

        if needs_mask:
            lane = jax.lax.broadcasted_iota(jnp.int32, xf.shape, 2)
            valid = (k * hw_tile + lane) < hw_total
            x_sum = jnp.where(valid, xf, 0.0)
            x_max = jnp.where(valid, xf, -jnp.inf)
        else:
            x_sum = xf
            x_max = xf

        tile_sum = jnp.sum(x_sum, axis=-1)            # (1, C)
        tile_max = jnp.max(x_max, axis=-1)            # (1, C)

        @pl.when(k == 0)
        def _init():
            sum_acc[...] = tile_sum
            max_acc[...] = tile_max

        @pl.when(k > 0)
        def _accum():
            sum_acc[...] = sum_acc[...] + tile_sum
            max_acc[...] = jnp.maximum(max_acc[...], tile_max)

        @pl.when(k == pl.num_programs(1) - 1)
        def _finalize():
            avg = sum_acc[...] * inv_hw               # (1, C)
            mx = max_acc[...]                         # (1, C)
            w1t = w1t_ref[...]
            w2t = w2t_ref[...]
            h_avg = jnp.maximum(
                jnp.dot(avg, w1t, preferred_element_type=jnp.float32), 0.0)
            h_max = jnp.maximum(
                jnp.dot(mx, w1t, preferred_element_type=jnp.float32), 0.0)
            # fc2 is linear -> fold the two branch matmuls into one.
            out = jnp.dot(h_avg + h_max, w2t,
                          preferred_element_type=jnp.float32)   # (1, C)
            o_ref[0] = jax.nn.sigmoid(out).astype(o_ref.dtype)

    return kernel


def channel_attention(x, w1, w2, *, hw_tile=None):
    """x: (B, C, H, W) NCHW. w1: (C//ratio, C), w2: (C, C//ratio).

    Returns sigmoid attention weights of shape (B, C, 1, 1), matching the
    PyTorch ChannelAttention forward.
    """
    B, C, H, W = x.shape
    Cr = w1.shape[0]
    assert w1.shape == (Cr, C) and w2.shape == (C, Cr)

    HW = H * W
    # Stream the activation in its native dtype (no extra HBM upcast pass).
    x_flat = x.reshape(B, C, HW)
    w1t = jnp.transpose(w1).astype(jnp.float32)   # (C, Cr)
    w2t = jnp.transpose(w2).astype(jnp.float32)   # (Cr, C)

    if hw_tile is None:
        hw_tile = _pick_hw_tile(HW, C, jnp.dtype(x.dtype).itemsize)
    k_steps = (HW + hw_tile - 1) // hw_tile
    needs_mask = (HW % hw_tile) != 0

    kernel = _make_kernel(HW, hw_tile, needs_mask)

    out = pl.pallas_call(
        kernel,
        out_shape=jax.ShapeDtypeStruct((B, 1, C), x.dtype),
        grid_spec=pltpu.PrefetchScalarGridSpec(
            num_scalar_prefetch=0,
            grid=(B, k_steps),
            in_specs=[
                pl.BlockSpec((1, C, hw_tile), lambda b, k: (b, 0, k)),
                pl.BlockSpec((C, Cr), lambda b, k: (0, 0)),   # resident weights
                pl.BlockSpec((Cr, C), lambda b, k: (0, 0)),   # resident weights
            ],
            out_specs=pl.BlockSpec((1, 1, C), lambda b, k: (b, 0, 0)),
            scratch_shapes=[
                pltpu.VMEM((1, C), jnp.float32),   # running sum
                pltpu.VMEM((1, C), jnp.float32),   # running max
            ],
        ),
        compiler_params=pltpu.CompilerParams(
            dimension_semantics=("parallel", "arbitrary"),
            vmem_limit_bytes=32 * 1024 * 1024,
        ),
    )(x_flat, w1t, w2t)

    return out.reshape(B, C, 1, 1)


def _reference(x, w1, w2):
    # Pure-JAX reference mirroring the PyTorch forward (math in f32).
    B, C, H, W = x.shape
    xf = x.astype(jnp.float32)
    w1f = w1.astype(jnp.float32)
    w2f = w2.astype(jnp.float32)
    avg = jnp.mean(xf, axis=(2, 3))            # (B, C)
    mx = jnp.max(xf, axis=(2, 3))              # (B, C)
    h_avg = jnp.maximum(avg @ w1f.T, 0.0)
    h_max = jnp.maximum(mx @ w1f.T, 0.0)
    out = h_avg @ w2f.T + h_max @ w2f.T
    return jax.nn.sigmoid(out).reshape(B, C, 1, 1).astype(x.dtype)


if __name__ == "__main__":
    key = jax.random.PRNGKey(0)
    k_x, k_w1, k_w2, k_x2 = jax.random.split(key, 4)

    B, C, ratio = 2, 64, 16
    Cr = C // ratio

    w1 = jax.random.normal(k_w1, (Cr, C), dtype=jnp.float32) * (1.0 / C) ** 0.5
    w2 = jax.random.normal(k_w2, (C, Cr), dtype=jnp.float32) * (1.0 / Cr) ** 0.5

    # Check 1: f32 input, force a 2-step spatial reduction (tests accumulator).
    x = jax.random.normal(k_x, (B, C, 16, 16), dtype=jnp.float32)
    out = jax.block_until_ready(channel_attention(x, w1, w2, hw_tile=128))
    ref = _reference(x, w1, w2)
    assert out.shape == (B, C, 1, 1)
    assert jnp.allclose(out, ref, atol=1e-5, rtol=1e-5)

    # Check 2: H*W not a multiple of the tile -> masked tail (0 / -inf).
    x2 = jax.random.normal(k_x2, (B, C, 12, 12), dtype=jnp.float32)
    out2 = jax.block_until_ready(channel_attention(x2, w1, w2, hw_tile=128))
    ref2 = _reference(x2, w1, w2)
    assert jnp.allclose(out2, ref2, atol=1e-5, rtol=1e-5)

    # Check 3: native bf16 streaming (no wrapper upcast), f32 accumulation.
    x3 = x.astype(jnp.bfloat16)
    out3 = jax.block_until_ready(channel_attention(x3, w1, w2))
    ref3 = _reference(x3, w1, w2)
    assert jnp.allclose(out3.astype(jnp.float32), ref3.astype(jnp.float32),
                        atol=2e-2, rtol=2e-2)

    print("KERNEL_OK")
</pallas_src>

<mosaic_0001>
module attributes {stable_mosaic.version = 11 : i64} {
  func.func @kernel(%arg0: i32, %arg1: i32, %arg2: memref<1x64x128xf32, #tpu.memory_space<vmem>>, %arg3: memref<64x4xf32, #tpu.memory_space<vmem>>, %arg4: memref<4x64xf32, #tpu.memory_space<vmem>>, %arg5: memref<1x1x64xf32, #tpu.memory_space<vmem>>, %arg6: memref<1x64xf32, #tpu.memory_space<vmem>>, %arg7: memref<1x64xf32, #tpu.memory_space<vmem>>) attributes {dimension_semantics = [#tpu.dimension_semantics<parallel>, #tpu.dimension_semantics<arbitrary>], iteration_bounds = array<i64: 2, 2>, scalar_prefetch = 0 : i64, scratch_operands = 2 : i64, tpu.core_type = #tpu.core_type<tc>, window_params = [{transform_indices = @transform_0, window_bounds = array<i64: 1, 64, 128>}, {pipeline_mode = #tpu.pipeline_mode<synchronous>, transform_indices = @transform_1, window_bounds = array<i64: 64, 4>}, {pipeline_mode = #tpu.pipeline_mode<synchronous>, transform_indices = @transform_2, window_bounds = array<i64: 4, 64>}, {transform_indices = @transform_3, window_bounds = array<i64: 1, 1, 64>}]} {
    %c0 = arith.constant 0 : index
    %c0_0 = arith.constant 0 : index
    %c0_1 = arith.constant 0 : index
    %0 = vector.load %arg2[%c0, %c0_0, %c0_1] : memref<1x64x128xf32, #tpu.memory_space<vmem>>, vector<1x64x128xf32>
    %cst = arith.constant dense<0.000000e+00> : vector<1x64xf32>
    %1 = vector.multi_reduction <add>, %0, %cst [2] : vector<1x64x128xf32> to vector<1x64xf32>
    %cst_2 = arith.constant dense<0xFF800000> : vector<1x64xf32>
    %2 = vector.multi_reduction <maximumf>, %0, %cst_2 [2] : vector<1x64x128xf32> to vector<1x64xf32>
    %c0_i32 = arith.constant 0 : i32
    %3 = arith.cmpi eq, %arg1, %c0_i32 : i32
    %4 = arith.extui %3 : i1 to i32
    %c0_i32_3 = arith.constant 0 : i32
    %5 = arith.cmpi ne, %4, %c0_i32_3 : i32
    scf.if %5 {
      %c0_7 = arith.constant 0 : index
      %c0_8 = arith.constant 0 : index
      %12 = vector.load %arg6[%c0_7, %c0_8] : memref<1x64xf32, #tpu.memory_space<vmem>>, vector<1x64xf32>
      tpu.vector_store %arg6[%c0_7, %c0_8], %1 {strides = array<i32>} : memref<1x64xf32, #tpu.memory_space<vmem>>, vector<1x64xf32>,
      %c0_9 = arith.constant 0 : index
      %c0_10 = arith.constant 0 : index
      %13 = vector.load %arg7[%c0_9, %c0_10] : memref<1x64xf32, #tpu.memory_space<vmem>>, vector<1x64xf32>
      tpu.vector_store %arg7[%c0_9, %c0_10], %2 {strides = array<i32>} : memref<1x64xf32, #tpu.memory_space<vmem>>, vector<1x64xf32>,
    } else {
    }
    %c0_i32_4 = arith.constant 0 : i32
    %6 = arith.cmpi sgt, %arg1, %c0_i32_4 : i32
    %7 = arith.extui %6 : i1 to i32
    %c0_i32_5 = arith.constant 0 : i32
    %8 = arith.cmpi ne, %7, %c0_i32_5 : i32
    scf.if %8 {
      %c0_7 = arith.constant 0 : index
      %c0_8 = arith.constant 0 : index
      %12 = vector.load %arg6[%c0_7, %c0_8] : memref<1x64xf32, #tpu.memory_space<vmem>>, vector<1x64xf32>
      %13 = arith.addf %12, %1 : vector<1x64xf32>
      %c0_9 = arith.constant 0 : index
      %c0_10 = arith.constant 0 : index
      %14 = vector.load %arg6[%c0_9, %c0_10] : memref<1x64xf32, #tpu.memory_space<vmem>>, vector<1x64xf32>
      tpu.vector_store %arg6[%c0_9, %c0_10], %13 {strides = array<i32>} : memref<1x64xf32, #tpu.memory_space<vmem>>, vector<1x64xf32>,
      %c0_11 = arith.constant 0 : index
      %c0_12 = arith.constant 0 : index
      %15 = vector.load %arg7[%c0_11, %c0_12] : memref<1x64xf32, #tpu.memory_space<vmem>>, vector<1x64xf32>
      %16 = arith.maximumf %15, %2 : vector<1x64xf32>
      %c0_13 = arith.constant 0 : index
      %c0_14 = arith.constant 0 : index
      %17 = vector.load %arg7[%c0_13, %c0_14] : memref<1x64xf32, #tpu.memory_space<vmem>>, vector<1x64xf32>
      tpu.vector_store %arg7[%c0_13, %c0_14], %16 {strides = array<i32>} : memref<1x64xf32, #tpu.memory_space<vmem>>, vector<1x64xf32>,
    } else {
    }
    %c1_i32 = arith.constant 1 : i32
    %9 = arith.cmpi eq, %arg1, %c1_i32 : i32
    %10 = arith.extui %9 : i1 to i32
    %c0_i32_6 = arith.constant 0 : i32
    %11 = arith.cmpi ne, %10, %c0_i32_6 : i32
    scf.if %11 {
      %c0_7 = arith.constant 0 : index
      %c0_8 = arith.constant 0 : index
      %12 = vector.load %arg6[%c0_7, %c0_8] : memref<1x64xf32, #tpu.memory_space<vmem>>, vector<1x64xf32>
      %cst_9 = arith.constant 3.906250e-03 : f32
      %13 = vector.broadcast %cst_9 : f32 to vector<1x64xf32>
      %14 = arith.mulf %12, %13 : vector<1x64xf32>
      %c0_10 = arith.constant 0 : index
      %c0_11 = arith.constant 0 : index
      %15 = vector.load %arg7[%c0_10, %c0_11] : memref<1x64xf32, #tpu.memory_space<vmem>>, vector<1x64xf32>
      %c0_12 = arith.constant 0 : index
      %c0_13 = arith.constant 0 : index
      %16 = vector.load %arg3[%c0_12, %c0_13] : memref<64x4xf32, #tpu.memory_space<vmem>>, vector<64x4xf32>
      %c0_14 = arith.constant 0 : index
      %c0_15 = arith.constant 0 : index
      %17 = vector.load %arg4[%c0_14, %c0_15] : memref<4x64xf32, #tpu.memory_space<vmem>>, vector<4x64xf32>
      %cst_16 = arith.constant dense<0.000000e+00> : vector<1x4xf32>
      %18 = tpu.matmul %14, %16, %cst_16 {dimension_numbers = #tpu.dot_dimension_numbers<[1], [0], [0], [1], [0, 0, 1, 1], [], []>} : vector<1x64xf32>, vector<64x4xf32>, vector<1x4xf32> -> vector<1x4xf32>
      %cst_17 = arith.constant 0.000000e+00 : f32
      %19 = vector.broadcast %cst_17 : f32 to vector<1x4xf32>
      %20 = arith.maximumf %18, %19 : vector<1x4xf32>
      %cst_18 = arith.constant dense<0.000000e+00> : vector<1x4xf32>
      %21 = tpu.matmul %15, %16, %cst_18 {dimension_numbers = #tpu.dot_dimension_numbers<[1], [0], [0], [1], [0, 0, 1, 1], [], []>} : vector<1x64xf32>, vector<64x4xf32>, vector<1x4xf32> -> vector<1x4xf32>
      %cst_19 = arith.constant 0.000000e+00 : f32
      %22 = vector.broadcast %cst_19 : f32 to vector<1x4xf32>
      %23 = arith.maximumf %21, %22 : vector<1x4xf32>
      %24 = arith.addf %20, %23 : vector<1x4xf32>
      %cst_20 = arith.constant dense<0.000000e+00> : vector<1x64xf32>
      %25 = tpu.matmul %24, %17, %cst_20 {dimension_numbers = #tpu.dot_dimension_numbers<[1], [0], [0], [1], [0, 0, 1, 1], [], []>} : vector<1x4xf32>, vector<4x64xf32>, vector<1x64xf32> -> vector<1x64xf32>
      %26 = arith.negf %25 : vector<1x64xf32>
      %27 = math.exp %26 : vector<1x64xf32>
      %cst_21 = arith.constant 1.000000e+00 : f32
      %28 = vector.broadcast %cst_21 : f32 to vector<1x64xf32>
      %29 = arith.addf %28, %27 : vector<1x64xf32>
      %30 = arith.divf %28, %29 : vector<1x64xf32>
      %c0_22 = arith.constant 0 : index
      %c0_23 = arith.constant 0 : index
      %c0_24 = arith.constant 0 : index
      %31 = vector.load %arg5[%c0_22, %c0_23, %c0_24] : memref<1x1x64xf32, #tpu.memory_space<vmem>>, vector<1x1x64xf32>
      %32 = vector.shape_cast %31 : vector<1x1x64xf32> to vector<1x64xf32>
      %33 = vector.shape_cast %30 : vector<1x64xf32> to vector<1x1x64xf32>
      tpu.vector_store %arg5[%c0_22, %c0_23, %c0_24], %33 {strides = array<i32>} : memref<1x1x64xf32, #tpu.memory_space<vmem>>, vector<1x1x64xf32>,
    } else {
    }
    return
  }
  func.func @transform_0(%arg0: i32, %arg1: i32) -> (i32, i32, i32) {
    %c0_i32 = arith.constant 0 : i32
    %c0_i32_0 = arith.constant 0 : i32
    return %arg0, %c0_i32, %arg1 : i32, i32, i32
  }
  func.func @transform_1(%arg0: i32, %arg1: i32) -> (i32, i32) {
    %c0_i32 = arith.constant 0 : i32
    %c0_i32_0 = arith.constant 0 : i32
    %c0_i32_1 = arith.constant 0 : i32
    return %c0_i32, %c0_i32_0 : i32, i32
  }
  func.func @transform_2(%arg0: i32, %arg1: i32) -> (i32, i32) {
    %c0_i32 = arith.constant 0 : i32
    %c0_i32_0 = arith.constant 0 : i32
    %c0_i32_1 = arith.constant 0 : i32
    return %c0_i32, %c0_i32_0 : i32, i32
  }
  func.func @transform_3(%arg0: i32, %arg1: i32) -> (i32, i32, i32) {
    %c0_i32 = arith.constant 0 : i32
    %c0_i32_0 = arith.constant 0 : i32
    %c0_i32_1 = arith.constant 0 : i32
    return %arg0, %c0_i32, %c0_i32_0 : i32, i32, i32
  }
}

</mosaic_0001>

<bundles_post_ra>
// kernel: tpu_custom_call.1
= control target key start
LH: loop header
LB: loop body
LE: loop exit
PB: predicated region body
PF: predicated region fallthrough
CT: control target
= control target key end

     0   :  { %8 = vsyncpa [#allocation5], 0  ;;  %s3261_s0 = inlined_call_operand.hbm [shape: f32[2,64,256], index: 0, kind: input, shape index: {}]   ;;  %s3262_s1 = inlined_call_operand.vmem [shape: f32[64,4], index: 1, kind: input, shape index: {}]   ;;  %s3263_s2 = inlined_call_operand.vmem [shape: f32[4,64], index: 2, kind: input, shape index: {}]   ;;  %s3264_s3 = inlined_call_operand.hbm [shape: f32[2,1,64], index: 3, kind: output, shape index: {}]  }
   0x1   :  { %10 = vsyncpa [#allocation5 + $0x1], 0 }
   0x2   :  { %11 = vsyncpa [#allocation6], 0 }
   0x3   :  { %13 = vsyncpa [#allocation6 + $0x1], 0  ;;  %s2578_s12 = smov 0   ;;  %s2580_s13 = smov 0  }
   0x4   :  { %s2582_s14 = smov 0   ;;  %s2584_s15 = smov 0  }
   0x5   :  { %s2586_s16 = smov 0   ;;  %s2588_s17 = smov 0  }
   0x6   :  { %s2590_s18 = smov 0   ;;  %s2592_s19 = smov 0  }
   0x7   :  { %s2594_s20 = smov 0   ;;  %s2596_s21 = smov 0  }
   0x8   :  { %s2598_s22 = smov 0  }
   0x9 LB: > { %3268 = sst [smem:[#allocation10_spill]] %s2527_s17  ;;  %s2201_s23 = sadd.s32 4294967295, %s2547_s22   ;;  %s2547_s22 = sphi %s2598_s22, %s19_s22   ;;  %s2543_s21 = sphi %s2596_s21, %s3289_s21   ;;  %s2539_s20 = sphi %s2594_s20, %s3288_s20   ;;  %s2535_s19 = sphi %s2592_s19, %s3287_s19   ;;  %s2531_s18 = sphi %s2590_s18, %s3286_s18   ;;  %s2527_s17 = sphi %s2588_s17, %s3278_s17   ;;  %s2523_s16 = sphi %s2586_s16, %s3285_s16   ;;  %s2519_s15 = sphi %s2584_s15, %s3284_s15   ;;  %s2515_s14 = sphi %s2582_s14, %s3283_s14   ;;  %s2511_s13 = sphi %s2580_s13, %s3282_s13   ;;  %s2507_s12 = sphi %s2578_s12, %s3281_s12  }
   0xa   : > { %s2202_s24 = sadd.s32 4294967294, %s2547_s22   ;;  %s28_s25 = sadd.s32 1, %s2539_s20 }
   0xb   : > { %s31_s26 = sadd.s32 1, %s2543_s21  ;;  %p29_p0 = scmp.ge.s32.totalorder %s28_s25, 2 }
   0xc   : > { %s40_s27 = sadd.s32 1, %s2527_s17  ;;  %p47_p1 = scmp.ne.s32.totalorder %s2527_s17, %s2523_s16 }
   0xd   : > { %p48_p2 = scmp.eq.s32.totalorder %s2547_s22, 0  ;;  %s3291_s25 = smov (%p29_p0, %s28_s25), 0 }
   0xe   : > { %3269 = sst [smem:[#allocation11_spill]] %s3291_s25  ;;  %s3293_s26 = smov (!%p29_p0, %s31_s26), %s2543_s21 }
   0xf   : > { %s36_s28 = ssub.s32 %s2539_s20, %s3291_s25  ;;  %p2644_p3 = por %p48_p2, %p47_p1 }
  0x10   : > { %p33_p4 = scmp.ge.s32.totalorder %s3293_s26, 2  ;;  %p53_p5 = scmp.ne.s32.totalorder %s2523_s16, %s2519_s15 }
  0x11   : > { %p54_p6 = scmp.eq.s32.totalorder %s2201_s23, 0  ;;  %s108_s30 = sadd.s32 1, %s2515_s14 }
  0x12   : > { %s3295_s26 = smov (%p33_p4, %s3293_s26), 0  ;;  %p118_p8 = scmp.ne.s32.totalorder %s2515_s14, %s2511_s13 }
  0x13   : > { %3271 = sst [smem:[#allocation12_spill]] %s3295_s26  ;;  %p2652_p7 = por %p54_p6, %p53_p5 }
  0x14   : > { %s35_s5 = ssub.s32 %s2543_s21, %s3295_s26  ;;  %p119_p9 = scmp.eq.s32.totalorder %s2201_s23, 3 }
  0x15   : > { %s37_s6 = sor.u32 %s36_s28, %s35_s5  ;;  %p106_p10 = scmp.eq.s32.totalorder %s35_s5, 0 }
  0x16   : > { %p38_p11 = scmp.eq.s32.totalorder %s37_s6, 0  ;;  %p2660_p12 = por %p119_p9, %p118_p8 }
  0x17   : > { %s2665_s8 = scalar_select %p106_p10, %s2515_s14, %s108_s30  }
  0x18   : > { %s2668_s9 = scalar_select %p38_p11, %s2527_s17, %s40_s27  }
  0x19   : > { %p124_p13 = scmp.ne.s32.totalorder %s2511_s13, %s2507_s12  ;;  %p125_p0 = scmp.eq.s32.totalorder %s2202_s24, 3 }
  0x1a   : > { %3274 = sst [smem:[#allocation13_spill]] %s2668_s9  ;;  %p2296_p1 = scmp.lt.s32.totalorder %s2547_s22, 4 }
  0x1b   : > { %p2673_p2 = por %p125_p0, %p124_p13  ;;  %s151_s11 = sand.u32 1, %s2527_s17  }
  0x1c   : > { %s2205_s15 = sshll.u32 %s151_s11, 6  ;;  %s2206_s23 = sshll.u32 %s2543_s21, 4 }
  0x1d   : > { %s160_s28 = sadd.s32 %s2539_s20, %s2206_s23  ;;  %s155_s5 = scalar_lea.vmem [#allocation4], %s2205_s15 }
  0x1e   : > { %s163_s6 = sshll.u32 %s155_s5, 4  ;;  %s2207_s26 = sshll.u32 %s160_s28, 7  ;;  %s164_s6 = int_to_ptr.vmem [resolvable:$true] %s163_s6 }
  0x1f   : > { %s162_s27 = scalar_lea.hbm %s3261_s0, %s2207_s26  ;;  %p2685_p4 = pnand %p2296_p1, %p2644_p3 }
  0x20   : > { %s152_s9 = scalar_lea.sflag [#allocation5], %s151_s11  ;;  %s2412_s17 = scalar_lea.vmem %s164_s6, 1024 }
  0x21   : > { %p2401_p5 = pneg %p2685_p4  ;;  %p2413_p6 = scmp.ne.s32.totalorder %s164_s6, %s2412_s17 }
  0x22   : > { %s2549_s15 = smov [#allocation4]  }
  0x23   : > { %p2415_p8 = pnand %p2413_p6, %p2401_p5  ;;  %s2417_s23 = sshll.u32 %s2549_s15, 4  ;;  %s2418_s23 = int_to_ptr.vmem [resolvable:$false] %s2417_s23 }
  0x24   : > { %s2419_s28 = scalar_lea.vmem %s2418_s23, 2048  ;;  %p2420_p10 = scmp.lt.s32.totalorder %s164_s6, %s2418_s23 }
  0x25   : > { %p2416_p9 = pneg %p2415_p8  ;;  %p2421_p11 = scmp.lt.s32.totalorder %s2419_s28, %s2412_s17 }
  0x27   : > { %p2422_p13 = por %p2421_p11, %p2420_p10 }
  0x29   : > { %p2423_p0 = pnand %p2422_p13, %p2416_p9 }
  0x2b   : > { %2426 = shalt.err (!%p2423_p0)
}
  0x2c   : > { %s2550_s25 = smov 256   ;;  %s2551_s26 = smov 128  }
  0x2d   : > { %s2552_s29 = smov 8   ;;  %p2208_p3 = scmp.ge.s32.totalorder %s2547_s22, 1 }
  0x2e   : > { %2291 = dma.hbm_to_vmem [thread:$0]  (!%p2685_p4), %s162_s27, 1024, %s164_s6, %s152_s9, %s2550_s25, %s2551_s26, %s2552_s29  }
  0x2f   : > { %p171_p1 = scmp.lt.s32.totalorder %s2547_s22, 5 }
  0x31   : > { %p172_p5 = pnand %p2208_p3, %p171_p1 }
  0x32   : > { %s177_s11 = sand.u32 (!%p172_p5), 1, %s2523_s16  }
  0x33   : > { %175 = sbr.rel (%p172_p5) target bundleno = 952 (0x3b8), region = 32  ;;  %s2209_s5 = sshll.u32 (!%p172_p5), %s177_s11, 6 }
  0x34   : > { %s178_s17 = scalar_lea.sflag (!%p172_p5), [#allocation5], %s177_s11  ;;  %s181_s30 = scalar_lea.vmem (!%p172_p5), [#allocation4], %s2209_s5 }
  0x38   : > { %2498 = dma.done.wait (%p2652_p7), %s178_s17, 1024  }
  0x39   : > { %2500 = vsyncadd (%p2652_p7), %s178_s17, 4294966272  ;;  %v205_v0 = vld [vmem:[%s181_s30 + $0x10] sm:$0xff]  ;;  %v203_v1 = vld [vmem:[%s181_s30] sm:$0xff]  ;;  %s201_s4 = sand.u32 1, %s2511_s13   ;;  %p2210_p7 = scmp.ne.s32.totalorder %s2531_s18, 0 }
  0x3a   : > { %215 = vadd.xlane.f32.xlu1 %v205_v0  ;;  %211 = vadd.xlane.f32.xlu0 %v203_v1  ;;  %v206_v2 = vld [vmem:[%s181_s30 + $0x18] sm:$0xff]  ;;  %v204_v3 = vld [vmem:[%s181_s30 + $0x8] sm:$0xff]  ;;  %v207_v5 = vld [vmem:[%s181_s30 + $0x20] sm:$0xff]  ;;  %s2735_s9 = scalar_lea.vmem [#allocation7], %s201_s4 }
  0x3b   : > { %v208_v4 = vld [vmem:[%s181_s30 + $0x28] sm:$0xff]  ;;  %v210_v6 = vld [vmem:[%s181_s30 + $0x38] sm:$0xff]  ;;  %v209_v7 = vld [vmem:[%s181_s30 + $0x30] sm:$0xff] }
  0x3e   : > { %217 = vadd.xlane.f32.xlu1 %v206_v2  ;;  %213 = vadd.xlane.f32.xlu0 %v204_v3 }
  0x42   : > { %221 = vadd.xlane.f32.xlu1 %v208_v4  ;;  %219 = vadd.xlane.f32.xlu0 %v207_v5 }
  0x46   : > { %225 = vadd.xlane.f32.xlu1 %v210_v6  ;;  %223 = vadd.xlane.f32.xlu0 %v209_v7 }
  0x4a   : > { %229 = vmax.xlane.f32.xlu1 %v204_v3  ;;  %227 = vmax.xlane.f32.xlu0 %v203_v1 }
  0x4e   : > { %233 = vmax.xlane.f32.xlu1 %v206_v2  ;;  %231 = vmax.xlane.f32.xlu0 %v205_v0 }
  0x52   : > { %237 = vmax.xlane.f32.xlu1 %v208_v4  ;;  %235 = vmax.xlane.f32.xlu0 %v207_v5 }
  0x56   : > { %241 = vmax.xlane.f32.xlu1 %v210_v6  ;;  %239 = vmax.xlane.f32.xlu0 %v209_v7 }
  0xc3   : > { %v2701_v8 = vpop.xlane.xlu1 %215  ;;  %v2703_v9 = vpop.xlane.xlu0 %211 }
  0xc7   : > { %v2705_v10 = vpop.xlane.xlu1 %217  ;;  %v2707_v11 = vpop.xlane.xlu0 %213 }
  0xcb   : > { %v2709_v12 = vpop.xlane.xlu1 %221  ;;  %v2711_v13 = vpop.xlane.xlu0 %219 }
  0xcf   : > { %v2713_v14 = vpop.xlane.xlu1 %225  ;;  %v2715_v15 = vpop.xlane.xlu0 %223 }
  0xd3   : > { %v2717_v16 = vpop.xlane.xlu1 %229  ;;  %v2719_v17 = vpop.xlane.xlu0 %227 }
  0xd7   : > { %v2721_v18 = vpop.xlane.xlu1 %233  ;;  %v2723_v19 = vpop.xlane.xlu0 %231 }
  0xdb   : > { %v2725_v20 = vpop.xlane.xlu1 %237  ;;  %v2727_v21 = vpop.xlane.xlu0 %235  ;;  %246 = sbr.rel (%p2210_p7) target bundleno = 243 (0xf3), region = 40 }
  0xdf   : > { %v2729_v22 = vpop.xlane.xlu1 %241  ;;  %v2731_v23 = vpop.xlane.xlu0 %239 }
  0xe0   : > { %v255_v24 = vlaneseq  ;;  %vm266_vm0 = vcmask 130112   ;;  %vm273_vm1 = vcmask 195712   ;;  %vm280_vm2 = vcmask 261312  }
  0xe1   : > { %vm287_vm3 = vcmask 326912   ;;  %vm294_vm4 = vcmask 392512   ;;  %vm301_vm5 = vcmask 458112   ;;  %vm308_vm6 = vcmask 523712  }
  0xe2   : > { %v256_v25 = vand.u32 127, %v255_v24  ;;  %v258_v26 = vshrl.u32 %v255_v24, 7  ;;  %vm311_vm7 = vcmask 516096  }
  0xe4   : > { %v259_v27 = vsub.s32 %v256_v25, %v258_v26  ;;  %v261_v28 = vadd.s32 4294967288, %v256_v25  ;;  %v268_v29 = vadd.s32 4294967280, %v256_v25  ;;  %v275_v30 = vadd.s32 4294967272, %v256_v25 }
  0xe5   : > { %v282_v31 = vadd.s32 4294967264, %v256_v25  ;;  %v289_v32 = vadd.s32 4294967256, %v256_v25  ;;  %v296_v33 = vadd.s32 4294967248, %v256_v25  ;;  %v303_v34 = vadd.s32 4294967240, %v256_v25 }
  0xe6   : > { %v260_v35 = vrot.slane %v2703_v9, %v259_v27  ;;  %v264_v36 = vsub.s32 %v261_v28, %v258_v26  ;;  %v271_v37 = vsub.s32 %v268_v29, %v258_v26  ;;  %v278_v38 = vsub.s32 %v275_v30, %v258_v26 }
  0xe7   : > { %v285_v39 = vsub.s32 %v282_v31, %v258_v26  ;;  %v292_v40 = vsub.s32 %v289_v32, %v258_v26  ;;  %v299_v41 = vsub.s32 %v296_v33, %v258_v26  ;;  %v306_v42 = vsub.s32 %v303_v34, %v258_v26 }
  0xe8   : > { %v265_v43 = vrot.slane %v2707_v11, %v264_v36  ;;  %v272_v44 = vrot.slane %v2701_v8, %v271_v37  ;;  %v279_v45 = vrot.slane %v2705_v10, %v278_v38  ;;  %v324_v46 = vrot.slane %v2719_v17, %v259_v27 }
  0xe9   : > { %v286_v47 = vrot.slane %v2711_v13, %v285_v39  ;;  %v293_v48 = vrot.slane %v2709_v12, %v292_v40  ;;  %v328_v50 = vrot.slane %v2717_v16, %v264_v36  ;;  %v333_v51 = vrot.slane %v2723_v19, %v271_v37 }
  0xea   : > { %v267_v49 = vsel %vm266_vm0, %v265_v43, %v260_v35  ;;  %v338_v52 = vrot.slane %v2721_v18, %v278_v38  ;;  %v300_v54 = vrot.slane %v2715_v15, %v299_v41  ;;  %v343_v55 = vrot.slane %v2727_v21, %v285_v39 }
  0xeb   : > { %v274_v53 = vsel %vm273_vm1, %v272_v44, %v267_v49  ;;  %v307_v57 = vrot.slane %v2713_v14, %v306_v42  ;;  %v329_v58 = vsel %vm266_vm0, %v328_v50, %v324_v46  ;;  %v348_v59 = vrot.slane %v2725_v20, %v292_v40 }
  0xec   : > { %v281_v56 = vsel %vm280_vm2, %v279_v45, %v274_v53  ;;  %v334_v61 = vsel %vm273_vm1, %v333_v51, %v329_v58  ;;  %v353_v62 = vrot.slane %v2731_v23, %v299_v41  ;;  %v358_v1 = vrot.slane %v2729_v22, %v306_v42 }
  0xed   : > { %v288_v60 = vsel %vm287_vm3, %v286_v47, %v281_v56  ;;  %v339_v0 = vsel %vm280_vm2, %v338_v52, %v334_v61 }
  0xee   : > { %v295_v63 = vsel %vm294_vm4, %v293_v48, %v288_v60  ;;  %v344_v3 = vsel %vm287_vm3, %v343_v55, %v339_v0 }
  0xef   : > { %v302_v2 = vsel %vm301_vm5, %v300_v54, %v295_v63  ;;  %v349_v5 = vsel %vm294_vm4, %v348_v59, %v344_v3 }
  0xf0   : > { %v309_v4 = vsel %vm308_vm6, %v307_v57, %v302_v2  ;;  %v354_v6 = vsel %vm301_vm5, %v353_v62, %v349_v5 }
  0xf1   : > { %312 = vst.msk [vmem:[#allocation2] sm:$0x1] %vm311_vm7, %v309_v4  ;;  %v359_v7 = vsel %vm308_vm6, %v358_v1, %v354_v6 }
  0xf2   : > { %361 = vst.msk [vmem:[#allocation3] sm:$0x1] %vm311_vm7, %v359_v7 }
  0xf3 PF: > { %p2211_p4 = scmp.le.s32.totalorder %s2531_s18, 0 }
  0xf5   : > { %365 = sbr.rel (%p2211_p4) target bundleno = 481 (0x1e1), region = 44 }
  0xfa   : > { %v375_v24 = vlaneseq  ;;  %v2553_v25 = vmov 0   ;;  %v2554_v26 = vmov 1966171168   ;;  %vm1058_vm8 = vcmask 130112  }
  0xfb   : > { %2394 = vset.pattern.permute.xlu1 %v2553_v25  ;;  %2393 = vset.pattern.permute.xlu0 %v2553_v25  ;;  %v636_v27 = vunpack.c.l.s4 %v2554_v26  ;;  %vm1065_vm9 = vcmask 195712   ;;  %vm1072_vm10 = vcmask 261312   ;;  %vm1079_vm11 = vcmask 326912  }
  0xfc   : > { %v2768_v28 = vshrl.u32 %v375_v24, 7  ;;  %vm1086_vm12 = vcmask 392512   ;;  %vm1093_vm13 = vcmask 458112   ;;  %vm1100_vm14 = vcmask 523712  }
  0xfd   : > { %v637_v29 = vunpack.c.0.s8 %v636_v27  ;;  %vm1118_vm15 = vcmask 516096  }
  0xfe   : > { %v2771_v30 = vsub.s32 0, %v2768_v28  ;;  %v2774_v31 = vsub.s32 1, %v2768_v28  ;;  %v2777_v32 = vsub.s32 2, %v2768_v28  ;;  %v2780_v33 = vsub.s32 3, %v2768_v28 }
  0xff   : > { %v2783_v34 = vsub.s32 4, %v2768_v28  ;;  %v2786_v35 = vsub.s32 5, %v2768_v28  ;;  %v2789_v36 = vsub.s32 6, %v2768_v28  ;;  %v2792_v37 = vsub.s32 7, %v2768_v28 }
 0x100   : > { %v2795_v38 = vsub.s32 %v637_v29, %v2768_v28  ;;  %v1132_v39 = vrot.slane %v2719_v17, %v2771_v30  ;;  %v1136_v40 = vrot.slane %v2719_v17, %v2774_v31  ;;  %v1140_v41 = vrot.slane %v2719_v17, %v2777_v32 }
 0x101   : > { %v1144_v42 = vrot.slane %v2719_v17, %v2780_v33  ;;  %v1148_v43 = vrot.slane %v2719_v17, %v2783_v34  ;;  %v1152_v44 = vrot.slane %v2719_v17, %v2786_v35  ;;  %v1156_v45 = vrot.slane %v2719_v17, %v2789_v36 }
 0x102   : > { %v1160_v46 = vrot.slane %v2719_v17, %v2792_v37  ;;  %v1385_v47 = vcombine.low %v1132_v39, %v1136_v40  ;;  %v378_v48 = vrot.slane %v2703_v9, %v2771_v30  ;;  %v382_v49 = vrot.slane %v2703_v9, %v2774_v31 }
 0x103   : > { %v1386_v50 = vcombine.low %v1140_v41, %v1144_v42  ;;  %v1387_v51 = vcombine.low %v1148_v43, %v1152_v44  ;;  %v386_v52 = vrot.slane %v2703_v9, %v2777_v32  ;;  %v390_v53 = vrot.slane %v2703_v9, %v2780_v33 }
 0x104   : > { %v1388_v54 = vcombine.low %v1156_v45, %v1160_v46  ;;  %v1395_v55 = vrot.slane %v1385_v47, %v2795_v38  ;;  %v394_v17 = vrot.slane %v2703_v9, %v2783_v34  ;;  %v398_v56 = vrot.slane %v2703_v9, %v2786_v35 }
 0x105   : > { %v1402_v57 = vrot.slane %v1386_v50, %v2795_v38  ;;  %v1409_v58 = vrot.slane %v1387_v51, %v2795_v38  ;;  %v402_v59 = vrot.slane %v2703_v9, %v2789_v36  ;;  %v406_v60 = vrot.slane %v2703_v9, %v2792_v37 }
 0x106   : > { %v1416_v61 = vrot.slane %v1388_v54, %v2795_v38  ;;  %v631_v62 = vcombine.low %v378_v48, %v382_v49  ;;  %v632_v63 = vcombine.low %v386_v52, %v390_v53  ;;  %v633_v0 = vcombine.low %v394_v17, %v398_v56 }
 0x107   : > { %v1417_v1 = vcombine.low %v1395_v55, %v1402_v57  ;;  %v634_v2 = vcombine.low %v402_v59, %v406_v60  ;;  %v1164_v3 = vrot.slane %v2717_v16, %v2771_v30  ;;  %v1168_v4 = vrot.slane %v2717_v16, %v2774_v31 }
 0x108   : > { %v1418_v5 = vcombine.low %v1409_v58, %v1416_v61  ;;  %v641_v6 = vrot.slane %v631_v62, %v2795_v38  ;;  %v648_v7 = vrot.slane %v632_v63, %v2795_v38  ;;  %v655_v9 = vrot.slane %v633_v0, %v2795_v38 }
 0x109   : > { %v1425_v25 = vrot.slane %v1417_v1, %v2795_v38  ;;  %v662_v26 = vrot.slane %v634_v2, %v2795_v38  ;;  %v1172_v27 = vrot.slane %v2717_v16, %v2777_v32  ;;  %v1176_v29 = vrot.slane %v2717_v16, %v2780_v33 }
 0x10a   : > { %v1432_v39 = vrot.slane %v1418_v5, %v2795_v38  ;;  %v663_v40 = vcombine.low %v641_v6, %v648_v7  ;;  %v1180_v41 = vrot.slane %v2717_v16, %v2783_v34  ;;  %v1184_v42 = vrot.slane %v2717_v16, %v2786_v35 }
 0x10b   : > { %v664_v43 = vcombine.low %v655_v9, %v662_v26  ;;  %v1188_v44 = vrot.slane %v2717_v16, %v2789_v36  ;;  %v1192_v45 = vrot.slane %v2717_v16, %v2792_v37  ;;  %v1434_v46 = vcombine.low %v1164_v3, %v1168_v4 }
 0x10c   : > { %v1433_v47 = vcombine.low %v1425_v25, %v1432_v39  ;;  %v671_v48 = vrot.slane %v663_v40, %v2795_v38  ;;  %v1435_v49 = vcombine.low %v1172_v27, %v1176_v29  ;;  %v1436_v50 = vcombine.low %v1180_v41, %v1184_v42 }
 0x10d   : > { %v678_v51 = vrot.slane %v664_v43, %v2795_v38  ;;  %v1437_v52 = vcombine.low %v1188_v44, %v1192_v45  ;;  %v1444_v53 = vrot.slane %v1434_v46, %v2795_v38  ;;  %v410_v54 = vrot.slane %v2707_v11, %v2771_v30 }
 0x10e   : > { %1778 = vperm.xlu1 %2394, %v1433_v47   ;;  %v1451_v55 = vrot.slane %v1435_v49, %v2795_v38  ;;  %v1458_v17 = vrot.slane %v1436_v50, %v2795_v38  ;;  %v414_v16 = vrot.slane %v2707_v11, %v2774_v31  ;;  %v418_v56 = vrot.slane %v2707_v11, %v2777_v32 }
 0x10f   : > { %v679_v57 = vcombine.low %v671_v48, %v678_v51  ;;  %v1465_v58 = vrot.slane %v1437_v52, %v2795_v38  ;;  %v422_v59 = vrot.slane %v2707_v11, %v2780_v33  ;;  %v426_v60 = vrot.slane %v2707_v11, %v2783_v34 }
 0x110   : > { %v1466_v61 = vcombine.low %v1444_v53, %v1451_v55  ;;  %v430_v62 = vrot.slane %v2707_v11, %v2786_v35  ;;  %v434_v63 = vrot.slane %v2707_v11, %v2789_v36  ;;  %v438_v0 = vrot.slane %v2707_v11, %v2792_v37 }
 0x111   : > { %1024 = vperm.xlu0 %2393, %v679_v57   ;;  %v1467_v1 = vcombine.low %v1458_v17, %v1465_v58  ;;  %v680_v2 = vcombine.low %v410_v54, %v414_v16  ;;  %v681_v3 = vcombine.low %v418_v56, %v422_v59  ;;  %v1196_v4 = vrot.slane %v2723_v19, %v2771_v30 }
 0x112   : > { %v1474_v5 = vrot.slane %v1466_v61, %v2795_v38  ;;  %v682_v6 = vcombine.low %v426_v60, %v430_v62  ;;  %v683_v7 = vcombine.low %v434_v63, %v438_v0  ;;  %v1200_v9 = vrot.slane %v2723_v19, %v2774_v31 }
 0x113   : > { %v1481_v25 = vrot.slane %v1467_v1, %v2795_v38  ;;  %v690_v26 = vrot.slane %v680_v2, %v2795_v38  ;;  %v697_v11 = vrot.slane %v681_v3, %v2795_v38  ;;  %v1204_v27 = vrot.slane %v2723_v19, %v2777_v32 }
 0x114   : > { %v704_v29 = vrot.slane %v682_v6, %v2795_v38  ;;  %v711_v39 = vrot.slane %v683_v7, %v2795_v38  ;;  %v1208_v40 = vrot.slane %v2723_v19, %v2780_v33  ;;  %v1212_v41 = vrot.slane %v2723_v19, %v2783_v34 }
 0x115   : > { %v1482_v42 = vcombine.low %v1474_v5, %v1481_v25  ;;  %v712_v43 = vcombine.low %v690_v26, %v697_v11  ;;  %v1216_v44 = vrot.slane %v2723_v19, %v2786_v35  ;;  %v1220_v45 = vrot.slane %v2723_v19, %v2789_v36 }
 0x116   : > { %v713_v46 = vcombine.low %v704_v29, %v711_v39  ;;  %v1224_v47 = vrot.slane %v2723_v19, %v2792_v37  ;;  %v1483_v48 = vcombine.low %v1196_v4, %v1200_v9  ;;  %v1484_v49 = vcombine.low %v1204_v27, %v1208_v40 }
 0x117   : > { %1781 = vperm.xlu1 %2394, %v1482_v42   ;;  %v720_v50 = vrot.slane %v712_v43, %v2795_v38  ;;  %v1485_v51 = vcombine.low %v1212_v41, %v1216_v44  ;;  %v442_v52 = vrot.slane %v2701_v8, %v2771_v30  ;;  %v446_v53 = vrot.slane %v2701_v8, %v2774_v31 }
 0x118   : > { %v727_v54 = vrot.slane %v713_v46, %v2795_v38  ;;  %v1486_v55 = vcombine.low %v1220_v45, %v1224_v47  ;;  %v1493_v17 = vrot.slane %v1483_v48, %v2795_v38  ;;  %v1500_v16 = vrot.slane %v1484_v49, %v2795_v38 }
 0x119   : > { %v1507_v19 = vrot.slane %v1485_v51, %v2795_v38  ;;  %v450_v56 = vrot.slane %v2701_v8, %v2777_v32  ;;  %v454_v57 = vrot.slane %v2701_v8, %v2780_v33  ;;  %v458_v58 = vrot.slane %v2701_v8, %v2783_v34 }
 0x11a   : > { %v728_v59 = vcombine.low %v720_v50, %v727_v54  ;;  %v1514_v60 = vrot.slane %v1486_v55, %v2795_v38  ;;  %v1515_v61 = vcombine.low %v1493_v17, %v1500_v16  ;;  %v462_v62 = vrot.slane %v2701_v8, %v2786_v35 }
 0x11b   : > { %v466_v63 = vrot.slane %v2701_v8, %v2789_v36  ;;  %v470_v0 = vrot.slane %v2701_v8, %v2792_v37  ;;  %v729_v1 = vcombine.low %v442_v52, %v446_v53  ;;  %v730_v2 = vcombine.low %v450_v56, %v454_v57 }
 0x11c   : > { %1027 = vperm.xlu0 %2393, %v728_v59   ;;  %v1516_v3 = vcombine.low %v1507_v19, %v1514_v60  ;;  %v1523_v4 = vrot.slane %v1515_v61, %v2795_v38  ;;  %v731_v5 = vcombine.low %v458_v58, %v462_v62  ;;  %v1228_v6 = vrot.slane %v2721_v18, %v2771_v30 }
 0x11d   : > { %v732_v7 = vcombine.low %v466_v63, %v470_v0  ;;  %v739_v9 = vrot.slane %v729_v1, %v2795_v38  ;;  %v746_v25 = vrot.slane %v730_v2, %v2795_v38  ;;  %v1232_v26 = vrot.slane %v2721_v18, %v2774_v31 }
 0x11e   : > { %v1530_v8 = vrot.slane %v1516_v3, %v2795_v38  ;;  %v753_v11 = vrot.slane %v731_v5, %v2795_v38  ;;  %v1236_v27 = vrot.slane %v2721_v18, %v2777_v32  ;;  %v1240_v29 = vrot.slane %v2721_v18, %v2780_v33 }
 0x11f   : > { %v760_v39 = vrot.slane %v732_v7, %v2795_v38  ;;  %v761_v40 = vcombine.low %v739_v9, %v746_v25  ;;  %v1244_v41 = vrot.slane %v2721_v18, %v2783_v34  ;;  %v1248_v42 = vrot.slane %v2721_v18, %v2786_v35 }
 0x120   : > { %v1531_v43 = vcombine.low %v1523_v4, %v1530_v8  ;;  %v1252_v44 = vrot.slane %v2721_v18, %v2789_v36  ;;  %v1256_v45 = vrot.slane %v2721_v18, %v2792_v37  ;;  %v1532_v46 = vcombine.low %v1228_v6, %v1232_v26 }
 0x121   : > { %v762_v47 = vcombine.low %v753_v11, %v760_v39  ;;  %v769_v48 = vrot.slane %v761_v40, %v2795_v38  ;;  %v1533_v49 = vcombine.low %v1236_v27, %v1240_v29  ;;  %v1534_v50 = vcombine.low %v1244_v41, %v1248_v42 }
 0x122   : > { %1784 = vperm.xlu1 %2394, %v1531_v43   ;;  %v1535_v51 = vcombine.low %v1252_v44, %v1256_v45  ;;  %v1542_v52 = vrot.slane %v1532_v46, %v2795_v38  ;;  %v474_v53 = vrot.slane %v2705_v10, %v2771_v30  ;;  %v478_v54 = vrot.slane %v2705_v10, %v2774_v31 }
 0x123   : > { %v776_v55 = vrot.slane %v762_v47, %v2795_v38  ;;  %v1549_v18 = vrot.slane %v1533_v49, %v2795_v38  ;;  %v1556_v17 = vrot.slane %v1534_v50, %v2795_v38  ;;  %v482_v16 = vrot.slane %v2705_v10, %v2777_v32 }
 0x124   : > { %v1563_v19 = vrot.slane %v1535_v51, %v2795_v38  ;;  %v486_v56 = vrot.slane %v2705_v10, %v2780_v33  ;;  %v490_v57 = vrot.slane %v2705_v10, %v2783_v34  ;;  %v494_v58 = vrot.slane %v2705_v10, %v2786_v35 }
 0x125   : > { %v777_v59 = vcombine.low %v769_v48, %v776_v55  ;;  %v1564_v60 = vcombine.low %v1542_v52, %v1549_v18  ;;  %v498_v61 = vrot.slane %v2705_v10, %v2789_v36  ;;  %v502_v62 = vrot.slane %v2705_v10, %v2792_v37 }
 0x126   : > { %v1565_v63 = vcombine.low %v1556_v17, %v1563_v19  ;;  %v778_v0 = vcombine.low %v474_v53, %v478_v54  ;;  %v779_v1 = vcombine.low %v482_v16, %v486_v56  ;;  %v780_v2 = vcombine.low %v490_v57, %v494_v58 }
 0x127   : > { %1030 = vperm.xlu0 %2393, %v777_v59   ;;  %v1572_v3 = vrot.slane %v1564_v60, %v2795_v38  ;;  %v781_v4 = vcombine.low %v498_v61, %v502_v62  ;;  %v1260_v5 = vrot.slane %v2727_v21, %v2771_v30  ;;  %v1264_v6 = vrot.slane %v2727_v21, %v2774_v31 }
 0x128   : > { %v1579_v7 = vrot.slane %v1565_v63, %v2795_v38  ;;  %v788_v9 = vrot.slane %v778_v0, %v2795_v38  ;;  %v795_v10 = vrot.slane %v779_v1, %v2795_v38  ;;  %v802_v25 = vrot.slane %v780_v2, %v2795_v38 }
 0x129   : > { %v809_v26 = vrot.slane %v781_v4, %v2795_v38  ;;  %v1268_v8 = vrot.slane %v2727_v21, %v2777_v32  ;;  %v1272_v11 = vrot.slane %v2727_v21, %v2780_v33  ;;  %v1276_v27 = vrot.slane %v2727_v21, %v2783_v34 }
 0x12a   : > { %v1580_v29 = vcombine.low %v1572_v3, %v1579_v7  ;;  %v810_v39 = vcombine.low %v788_v9, %v795_v10  ;;  %v1280_v40 = vrot.slane %v2727_v21, %v2786_v35  ;;  %v1284_v41 = vrot.slane %v2727_v21, %v2789_v36 }
 0x12b   : > { %v811_v42 = vcombine.low %v802_v25, %v809_v26  ;;  %v1288_v43 = vrot.slane %v2727_v21, %v2792_v37  ;;  %v1581_v44 = vcombine.low %v1260_v5, %v1264_v6  ;;  %v1582_v45 = vcombine.low %v1268_v8, %v1272_v11 }
 0x12c   : > { %1787 = vperm.xlu1 %2394, %v1580_v29   ;;  %v818_v46 = vrot.slane %v810_v39, %v2795_v38  ;;  %v1583_v47 = vcombine.low %v1276_v27, %v1280_v40  ;;  %v506_v48 = vrot.slane %v2711_v13, %v2771_v30  ;;  %v510_v49 = vrot.slane %v2711_v13, %v2774_v31 }
 0x12d   : > { %v825_v50 = vrot.slane %v811_v42, %v2795_v38  ;;  %v1584_v51 = vcombine.low %v1284_v41, %v1288_v43  ;;  %v1591_v52 = vrot.slane %v1581_v44, %v2795_v38  ;;  %v1598_v53 = vrot.slane %v1582_v45, %v2795_v38 }
 0x12e   : > { %v1605_v21 = vrot.slane %v1583_v47, %v2795_v38  ;;  %v514_v54 = vrot.slane %v2711_v13, %v2777_v32  ;;  %v518_v55 = vrot.slane %v2711_v13, %v2780_v33  ;;  %v522_v18 = vrot.slane %v2711_v13, %v2783_v34 }
 0x12f   : > { %v826_v17 = vcombine.low %v818_v46, %v825_v50  ;;  %v1612_v16 = vrot.slane %v1584_v51, %v2795_v38  ;;  %v1613_v19 = vcombine.low %v1591_v52, %v1598_v53  ;;  %v526_v56 = vrot.slane %v2711_v13, %v2786_v35 }
 0x130   : > { %v530_v57 = vrot.slane %v2711_v13, %v2789_v36  ;;  %v534_v58 = vrot.slane %v2711_v13, %v2792_v37  ;;  %v827_v59 = vcombine.low %v506_v48, %v510_v49  ;;  %v828_v60 = vcombine.low %v514_v54, %v518_v55 }
 0x131   : > { %1033 = vperm.xlu0 %2393, %v826_v17   ;;  %v1614_v61 = vcombine.low %v1605_v21, %v1612_v16  ;;  %v1621_v62 = vrot.slane %v1613_v19, %v2795_v38  ;;  %v829_v63 = vcombine.low %v522_v18, %v526_v56  ;;  %v1292_v0 = vrot.slane %v2725_v20, %v2771_v30 }
 0x132   : > { %v830_v1 = vcombine.low %v530_v57, %v534_v58  ;;  %v837_v2 = vrot.slane %v827_v59, %v2795_v38  ;;  %v844_v3 = vrot.slane %v828_v60, %v2795_v38  ;;  %v1296_v4 = vrot.slane %v2725_v20, %v2774_v31 }
 0x133   : > { %v1628_v13 = vrot.slane %v1614_v61, %v2795_v38  ;;  %v851_v5 = vrot.slane %v829_v63, %v2795_v38  ;;  %v1300_v6 = vrot.slane %v2725_v20, %v2777_v32  ;;  %v1304_v7 = vrot.slane %v2725_v20, %v2780_v33 }
 0x134   : > { %v858_v9 = vrot.slane %v830_v1, %v2795_v38  ;;  %v859_v10 = vcombine.low %v837_v2, %v844_v3  ;;  %v1308_v25 = vrot.slane %v2725_v20, %v2783_v34  ;;  %v1312_v26 = vrot.slane %v2725_v20, %v2786_v35 }
 0x135   : > { %v1629_v8 = vcombine.low %v1621_v62, %v1628_v13  ;;  %v1316_v11 = vrot.slane %v2725_v20, %v2789_v36  ;;  %v1320_v27 = vrot.slane %v2725_v20, %v2792_v37  ;;  %v1630_v29 = vcombine.low %v1292_v0, %v1296_v4 }
 0x136   : > { %v860_v39 = vcombine.low %v851_v5, %v858_v9  ;;  %v867_v40 = vrot.slane %v859_v10, %v2795_v38  ;;  %v1631_v41 = vcombine.low %v1300_v6, %v1304_v7  ;;  %v1632_v42 = vcombine.low %v1308_v25, %v1312_v26 }
 0x137   : > { %1790 = vperm.xlu1 %2394, %v1629_v8   ;;  %v1633_v43 = vcombine.low %v1316_v11, %v1320_v27  ;;  %v1640_v44 = vrot.slane %v1630_v29, %v2795_v38  ;;  %v538_v45 = vrot.slane %v2709_v12, %v2771_v30  ;;  %v542_v46 = vrot.slane %v2709_v12, %v2774_v31 }
 0x138   : > { %v874_v47 = vrot.slane %v860_v39, %v2795_v38  ;;  %v1647_v20 = vrot.slane %v1631_v41, %v2795_v38  ;;  %v1654_v48 = vrot.slane %v1632_v42, %v2795_v38  ;;  %v546_v49 = vrot.slane %v2709_v12, %v2777_v32 }
 0x139   : > { %v1661_v50 = vrot.slane %v1633_v43, %v2795_v38  ;;  %v550_v51 = vrot.slane %v2709_v12, %v2780_v33  ;;  %v554_v52 = vrot.slane %v2709_v12, %v2783_v34  ;;  %v558_v53 = vrot.slane %v2709_v12, %v2786_v35 }
 0x13a   : > { %v875_v21 = vcombine.low %v867_v40, %v874_v47  ;;  %v1662_v54 = vcombine.low %v1640_v44, %v1647_v20  ;;  %v562_v55 = vrot.slane %v2709_v12, %v2789_v36  ;;  %v566_v18 = vrot.slane %v2709_v12, %v2792_v37 }
 0x13b   : > { %v1663_v17 = vcombine.low %v1654_v48, %v1661_v50  ;;  %v876_v16 = vcombine.low %v538_v45, %v542_v46  ;;  %v877_v19 = vcombine.low %v546_v49, %v550_v51  ;;  %v878_v56 = vcombine.low %v554_v52, %v558_v53 }
 0x13c   : > { %1036 = vperm.xlu0 %2393, %v875_v21   ;;  %v1670_v57 = vrot.slane %v1662_v54, %v2795_v38  ;;  %v879_v58 = vcombine.low %v562_v55, %v566_v18  ;;  %v1324_v59 = vrot.slane %v2731_v23, %v2771_v30  ;;  %v1328_v60 = vrot.slane %v2731_v23, %v2774_v31 }
 0x13d   : > { %v1677_v61 = vrot.slane %v1663_v17, %v2795_v38  ;;  %v886_v62 = vrot.slane %v876_v16, %v2795_v38  ;;  %v893_v12 = vrot.slane %v877_v19, %v2795_v38  ;;  %v900_v63 = vrot.slane %v878_v56, %v2795_v38 }
 0x13e   : > { %v907_v0 = vrot.slane %v879_v58, %v2795_v38  ;;  %v1332_v1 = vrot.slane %v2731_v23, %v2777_v32  ;;  %v1336_v2 = vrot.slane %v2731_v23, %v2780_v33  ;;  %v1340_v3 = vrot.slane %v2731_v23, %v2783_v34 }
 0x13f   : > { %v1678_v4 = vcombine.low %v1670_v57, %v1677_v61  ;;  %v908_v13 = vcombine.low %v886_v62, %v893_v12  ;;  %v1344_v5 = vrot.slane %v2731_v23, %v2786_v35  ;;  %v1348_v6 = vrot.slane %v2731_v23, %v2789_v36 }
 0x140   : > { %v909_v7 = vcombine.low %v900_v63, %v907_v0  ;;  %v1352_v9 = vrot.slane %v2731_v23, %v2792_v37  ;;  %v1679_v10 = vcombine.low %v1324_v59, %v1328_v60  ;;  %v1680_v25 = vcombine.low %v1332_v1, %v1336_v2 }
 0x141   : > { %1793 = vperm.xlu1 %2394, %v1678_v4   ;;  %v916_v26 = vrot.slane %v908_v13, %v2795_v38  ;;  %v1681_v8 = vcombine.low %v1340_v3, %v1344_v5  ;;  %v570_v11 = vrot.slane %v2715_v15, %v2771_v30  ;;  %v574_v27 = vrot.slane %v2715_v15, %v2774_v31 }
 0x142   : > { %v923_v29 = vrot.slane %v909_v7, %v2795_v38  ;;  %v1682_v39 = vcombine.low %v1348_v6, %v1352_v9  ;;  %v1689_v40 = vrot.slane %v1679_v10, %v2795_v38  ;;  %v1696_v41 = vrot.slane %v1680_v25, %v2795_v38 }
 0x143   : > { %v1703_v23 = vrot.slane %v1681_v8, %v2795_v38  ;;  %v578_v42 = vrot.slane %v2715_v15, %v2777_v32  ;;  %v582_v43 = vrot.slane %v2715_v15, %v2780_v33  ;;  %v586_v44 = vrot.slane %v2715_v15, %v2783_v34 }
 0x144   : > { %v924_v45 = vcombine.low %v916_v26, %v923_v29  ;;  %v1710_v46 = vrot.slane %v1682_v39, %v2795_v38  ;;  %v1711_v47 = vcombine.low %v1689_v40, %v1696_v41  ;;  %v590_v20 = vrot.slane %v2715_v15, %v2786_v35 }
 0x145   : > { %v594_v48 = vrot.slane %v2715_v15, %v2789_v36  ;;  %v598_v49 = vrot.slane %v2715_v15, %v2792_v37  ;;  %v925_v50 = vcombine.low %v570_v11, %v574_v27  ;;  %v926_v51 = vcombine.low %v578_v42, %v582_v43 }
 0x146   : > { %1039 = vperm.xlu0 %2393, %v924_v45   ;;  %v1712_v52 = vcombine.low %v1703_v23, %v1710_v46  ;;  %v1719_v53 = vrot.slane %v1711_v47, %v2795_v38  ;;  %v927_v21 = vcombine.low %v586_v44, %v590_v20  ;;  %v1356_v54 = vrot.slane %v2729_v22, %v2771_v30 }
 0x147   : > { %v928_v55 = vcombine.low %v594_v48, %v598_v49  ;;  %v935_v18 = vrot.slane %v925_v50, %v2795_v38  ;;  %v942_v17 = vrot.slane %v926_v51, %v2795_v38  ;;  %v1360_v16 = vrot.slane %v2729_v22, %v2774_v31 }
 0x148   : > { %v1726_v15 = vrot.slane %v1712_v52, %v2795_v38  ;;  %v949_v19 = vrot.slane %v927_v21, %v2795_v38  ;;  %v1364_v56 = vrot.slane %v2729_v22, %v2777_v32  ;;  %v1368_v57 = vrot.slane %v2729_v22, %v2780_v33 }
 0x149   : > { %v956_v58 = vrot.slane %v928_v55, %v2795_v38  ;;  %v957_v59 = vcombine.low %v935_v18, %v942_v17  ;;  %v1372_v60 = vrot.slane %v2729_v22, %v2783_v34  ;;  %v1376_v61 = vrot.slane %v2729_v22, %v2786_v35 }
 0x14a   : > { %v1727_v62 = vcombine.low %v1719_v53, %v1726_v15  ;;  %v1380_v12 = vrot.slane %v2729_v22, %v2789_v36  ;;  %v1384_v63 = vrot.slane %v2729_v22, %v2792_v37  ;;  %v1728_v0 = vcombine.low %v1356_v54, %v1360_v16 }
 0x14b   : > { %v958_v1 = vcombine.low %v949_v19, %v956_v58  ;;  %v965_v2 = vrot.slane %v957_v59, %v2795_v38  ;;  %v1729_v3 = vcombine.low %v1364_v56, %v1368_v57  ;;  %v1730_v4 = vcombine.low %v1372_v60, %v1376_v61 }
 0x14c   : > { %1796 = vperm.xlu1 %2394, %v1727_v62   ;;  %v1731_v13 = vcombine.low %v1380_v12, %v1384_v63  ;;  %v1738_v5 = vrot.slane %v1728_v0, %v2795_v38  ;;  %v602_v6 = vrot.slane %v2713_v14, %v2771_v30  ;;  %v606_v7 = vrot.slane %v2713_v14, %v2774_v31 }
 0x14d   : > { %v972_v9 = vrot.slane %v958_v1, %v2795_v38  ;;  %v1745_v22 = vrot.slane %v1729_v3, %v2795_v38  ;;  %v1752_v10 = vrot.slane %v1730_v4, %v2795_v38  ;;  %v610_v25 = vrot.slane %v2713_v14, %v2777_v32 }
 0x14e   : > { %v1759_v26 = vrot.slane %v1731_v13, %v2795_v38  ;;  %v614_v8 = vrot.slane %v2713_v14, %v2780_v33  ;;  %v618_v30 = vrot.slane %v2713_v14, %v2783_v34  ;;  %v622_v31 = vrot.slane %v2713_v14, %v2786_v35 }
 0x14f   : > { %v973_v11 = vcombine.low %v965_v2, %v972_v9  ;;  %v1760_v27 = vcombine.low %v1738_v5, %v1745_v22  ;;  %v626_v29 = vrot.slane %v2713_v14, %v2789_v36  ;;  %v630_v39 = vrot.slane %v2713_v14, %v2792_v37 }
 0x150   : > { %v1761_v32 = vcombine.low %v1752_v10, %v1759_v26  ;;  %v974_v40 = vcombine.low %v602_v6, %v606_v7  ;;  %v975_v41 = vcombine.low %v610_v25, %v614_v8  ;;  %v976_v23 = vcombine.low %v618_v30, %v622_v31 }
 0x151   : > { %1042 = vperm.xlu0 %2393, %v973_v11   ;;  %v1768_v33 = vrot.slane %v1760_v27, %v2795_v38  ;;  %v977_v42 = vcombine.low %v626_v29, %v630_v39  ;;  %v1048_v18 = vand.u32 127, %v375_v24 }
 0x152   : > { %v1775_v34 = vrot.slane %v1761_v32, %v2795_v38  ;;  %v984_v35 = vrot.slane %v974_v40, %v2795_v38  ;;  %v991_v43 = vrot.slane %v975_v41, %v2795_v38  ;;  %v998_v44 = vrot.slane %v976_v23, %v2795_v38 }
 0x153   : > { %v1005_v36 = vrot.slane %v977_v42, %v2795_v38  ;;  %v1053_v17 = vadd.s32 4294967288, %v1048_v18  ;;  %v1060_v16 = vadd.s32 4294967280, %v1048_v18  ;;  %v1067_v15 = vadd.s32 4294967272, %v1048_v18 }
 0x154   : > { %v1776_v45 = vcombine.low %v1768_v33, %v1775_v34  ;;  %v1006_v14 = vcombine.low %v984_v35, %v991_v43  ;;  %v1074_v56 = vadd.s32 4294967264, %v1048_v18  ;;  %v1081_v59 = vadd.s32 4294967256, %v1048_v18 }
 0x155   : > { %v1007_v37 = vcombine.low %v998_v44, %v1005_v36  ;;  %v1056_v58 = vsub.s32 %v1053_v17, %v2768_v28  ;;  %v1063_v60 = vsub.s32 %v1060_v16, %v2768_v28  ;;  %v1088_v61 = vadd.s32 4294967248, %v1048_v18 }
 0x156   : > { %1799 = vperm.xlu1 %2394, %v1776_v45   ;;  %v1014_v46 = vrot.slane %v1006_v14, %v2795_v38  ;;  %v1051_v62 = vsub.s32 %v1048_v18, %v2768_v28  ;;  %v1070_v12 = vsub.s32 %v1067_v15, %v2768_v28  ;;  %v1077_v63 = vsub.s32 %v1074_v56, %v2768_v28  ;;  %v1120_v14 = vld [vmem:[#allocation3] sm:$0x1] }
 0x157   : > { %v1021_v47 = vrot.slane %v1007_v37, %v2795_v38  ;;  %v1084_v24 = vsub.s32 %v1081_v59, %v2768_v28  ;;  %v1095_v2 = vadd.s32 4294967240, %v1048_v18  ;;  %v1091_v4 = vsub.s32 %v1088_v61, %v2768_v28 }
 0x159   : > { %v1022_v20 = vcombine.low %v1014_v46, %v1021_v47  ;;  %v1098_v10 = vsub.s32 %v1095_v2, %v2768_v28 }
 0x15b   : > { %1045 = vperm.xlu0 %2393, %v1022_v20  }
 0x189   : > { %v1779_v48 = vpop.permute.xlu1 %1778 }
 0x18a   : > { %v1804_v5 = vrot.slane %v1779_v48, %v1051_v62 }
 0x18c   : > { %v1025_v49 = vpop.permute.xlu0 %1024 }
 0x18d   : > { %v1052_v27 = vrot.slane %v1025_v49, %v1051_v62 }
 0x192   : > { %v1782_v50 = vpop.permute.xlu1 %1781 }
 0x193   : > { %v1808_v0 = vrot.slane %v1782_v50, %v1056_v58 }
 0x195   : > { %v1809_v9 = vsel %vm1058_vm8, %v1808_v0, %v1804_v5 }
 0x197   : > { %v1028_v51 = vpop.permute.xlu0 %1027 }
 0x198   : > { %v1057_v25 = vrot.slane %v1028_v51, %v1056_v58 }
 0x19a   : > { %v1059_v23 = vsel %vm1058_vm8, %v1057_v25, %v1052_v27 }
 0x19d   : > { %v1785_v52 = vpop.permute.xlu1 %1784 }
 0x19e   : > { %v1813_v3 = vrot.slane %v1785_v52, %v1063_v60  ;;  %v366_v52 = vld [vmem:[#allocation2] sm:$0x1] }
 0x1a0   : > { %v1814_v26 = vsel %vm1065_vm9, %v1813_v3, %v1809_v9 }
 0x1a2   : > { %v1031_v53 = vpop.permute.xlu0 %1030 }
 0x1a3   : > { %v1064_v30 = vrot.slane %v1031_v53, %v1063_v60 }
 0x1a5   : > { %v1066_v34 = vsel %vm1065_vm9, %v1064_v30, %v1059_v23 }
 0x1a7   : > { %v1788_v21 = vpop.permute.xlu1 %1787 }
 0x1a8   : > { %v1818_v6 = vrot.slane %v1788_v21, %v1070_v12 }
 0x1aa   : > { %v1819_v31 = vsel %vm1072_vm10, %v1818_v6, %v1814_v26 }
 0x1ac   : > { %v1034_v54 = vpop.permute.xlu0 %1033 }
 0x1ad   : > { %v1071_v29 = vrot.slane %v1034_v54, %v1070_v12 }
 0x1af   : > { %v1073_v44 = vsel %vm1072_vm10, %v1071_v29, %v1066_v34 }
 0x1b2   : > { %v1791_v55 = vpop.permute.xlu1 %1790 }
 0x1b3   : > { %v1823_v7 = vrot.slane %v1791_v55, %v1077_v63 }
 0x1b5   : > { %v1824_v39 = vsel %vm1079_vm11, %v1823_v7, %v1819_v31 }
 0x1b7   : > { %v1037_v19 = vpop.permute.xlu0 %1036 }
 0x1b8   : > { %v1078_v40 = vrot.slane %v1037_v19, %v1077_v63 }
 0x1ba   : > { %v1080_v45 = vsel %vm1079_vm11, %v1078_v40, %v1073_v44 }
 0x1bc   : > { %v1794_v57 = vpop.permute.xlu1 %1793 }
 0x1bd   : > { %v1828_v22 = vrot.slane %v1794_v57, %v1084_v24 }
 0x1bf   : > { %v1829_v41 = vsel %vm1086_vm12, %v1828_v22, %v1824_v39 }
 0x1c1   : > { %v1040_v1 = vpop.permute.xlu0 %1039 }
 0x1c2   : > { %v1085_v33 = vrot.slane %v1040_v1, %v1084_v24 }
 0x1c4   : > { %v1087_v46 = vsel %vm1086_vm12, %v1085_v33, %v1080_v45 }
 0x1c7   : > { %v1797_v13 = vpop.permute.xlu1 %1796 }
 0x1c8   : > { %v1833_v8 = vrot.slane %v1797_v13, %v1091_v4 }
 0x1ca   : > { %v1834_v42 = vsel %vm1093_vm13, %v1833_v8, %v1829_v41 }
 0x1cc   : > { %v1043_v11 = vpop.permute.xlu0 %1042 }
 0x1cd   : > { %v1092_v35 = vrot.slane %v1043_v11, %v1091_v4 }
 0x1cf   : > { %v1094_v48 = vsel %vm1093_vm13, %v1092_v35, %v1087_v46 }
 0x1d1   : > { %v1800_v32 = vpop.permute.xlu1 %1799 }
 0x1d2   : > { %v1838_v28 = vrot.slane %v1800_v32, %v1098_v10 }
 0x1d4   : > { %v1839_v43 = vsel %vm1100_vm14, %v1838_v28, %v1834_v42 }
 0x1d5   : > { %v1846_v36 = vrot.slane %v1839_v43, %v2795_v38 }
 0x1d6   : > { %v1046_v37 = vpop.permute.xlu0 %1045 }
 0x1d7   : > { %v1853_v47 = vrot.slane %v1846_v36, %v2795_v38  ;;  %v1099_v20 = vrot.slane %v1046_v37, %v1098_v10 }
 0x1d9   : > { %v1855_v49 = vmax.f32 %v1120_v14, %v1853_v47  ;;  %v1101_v50 = vsel %vm1100_vm14, %v1099_v20, %v1094_v48 }
 0x1da   : > { %v1108_v51 = vrot.slane %v1101_v50, %v2795_v38 }
 0x1db   : > { %1856 = vst.msk [vmem:[#allocation3] sm:$0x1] %vm1118_vm15, %v1855_v49 }
 0x1dc   : > { %v1115_v53 = vrot.slane %v1108_v51, %v2795_v38 }
 0x1de   : > { %v1117_v21 = vadd.f32 %v1115_v53, %v366_v52 }
 0x1e0   : > { %1119 = vst.msk [vmem:[#allocation2] sm:$0x1] %vm1118_vm15, %v1117_v21 }
 0x1e1 PF: > { %p2212_p6 = scmp.ne.s32.totalorder %s2531_s18, 1 }
 0x1e3   : > { %1860 = sbr.rel (%p2212_p6) target bundleno = 929 (0x3a1), region = 48 }
 0x1e8   : > { %v1871_v54 = vld [vmem:[%s3262_s1 + $0x38] sm:$0xff]  ;;  %v2555_v55 = vmov 0.0   ;;  %v1870_v18 = vld [vmem:[%s3262_s1 + $0x30] sm:$0xff]  ;;  %v1869_v38 = vld [vmem:[%s3262_s1 + $0x28] sm:$0xff]  ;;  %vm1873_vm0 = vcmask 523264   ;;  %vm2556_vm1 = vmmov 0  }
 0x1e9   : > { %2241 = vmatprep.subr.mxu0 %v2555_v55  ;;  %2260 = vmatprep.subr.mxu1 %v2555_v55  ;;  %v1868_v17 = vld [vmem:[%s3262_s1 + $0x20] sm:$0xff]  ;;  %v1867_v16 = vld [vmem:[%s3262_s1 + $0x18] sm:$0xff]  ;;  %v1866_v15 = vld [vmem:[%s3262_s1 + $0x10] sm:$0xff]  ;;  %vm2027_vm2 = vcmask 1043456   ;;  %vm2023_vm3 = vcmask 31744   ;;  %vm2107_vm4 = vcmask 516096  }
 0x1ea   : > { %2242 = vmatpush3.msra.mxu0 %v1871_v54  ;;  %2261 = vmatpush3.msra.mxu1 %v1871_v54  ;;  %v1865_v19 = vld [vmem:[%s3262_s1 + $0x8] sm:$0xff]  ;;  %v1861_v56 = vld [vmem:[#allocation2] sm:$0x1]  ;;  %v1863_v59 = vld [vmem:[#allocation3] sm:$0x1] }
 0x1eb   : > { %2243 = vmatprep.subr.mxu0 %v2555_v55  ;;  %2262 = vmatprep.subr.mxu1 %v2555_v55  ;;  %v1864_v57 = vld [vmem:[%s3262_s1] sm:$0xff]  ;;  %v1862_v58 = vmul.f32 0.00390625, %v1861_v56 }
 0x1ec   : > { %2244 = vmatpush3.msra.mxu0 %v1870_v18  ;;  %2263 = vmatpush3.msra.mxu1 %v1870_v18  ;;  %v1872_v60 = vld [vmem:[%s3263_s2] sm:$0xf] }
 0x1ed   : > { %2245 = vmatprep.subr.mxu0 %v2555_v55  ;;  %2264 = vmatprep.subr.mxu1 %v2555_v55 }
 0x1ee   : > { %2246 = vmatpush3.msra.mxu0 %v1869_v38  ;;  %2265 = vmatpush3.msra.mxu1 %v1869_v38 }
 0x1ef   : > { %2247 = vmatprep.subr.mxu0 %v2555_v55  ;;  %2266 = vmatprep.subr.mxu1 %v2555_v55 }
 0x1f0   : > { %2248 = vmatpush3.msra.mxu0 %v1868_v17  ;;  %2267 = vmatpush3.msra.mxu1 %v1868_v17 }
 0x1f1   : > { %2249 = vmatprep.subr.mxu0 %v2555_v55  ;;  %2268 = vmatprep.subr.mxu1 %v2555_v55 }
 0x1f2   : > { %2250 = vmatpush3.msra.mxu0 %v1867_v16  ;;  %2269 = vmatpush3.msra.mxu1 %v1867_v16 }
 0x1f3   : > { %2251 = vmatprep.subr.mxu0 %v2555_v55  ;;  %2270 = vmatprep.subr.mxu1 %v2555_v55 }
 0x1f4   : > { %2252 = vmatpush3.msra.mxu0 %v1866_v15  ;;  %2271 = vmatpush3.msra.mxu1 %v1866_v15 }
 0x1f5   : > { %2253 = vmatprep.subr.mxu0 %v2555_v55  ;;  %2272 = vmatprep.subr.mxu1 %v2555_v55 }
 0x1f6   : > { %2254 = vmatpush3.msra.mxu0 %v1865_v19  ;;  %2273 = vmatpush3.msra.mxu1 %v1865_v19 }
 0x1f7   : > { %2255 = vmatprep.subr.mxu0 %v2555_v55  ;;  %2274 = vmatprep.subr.mxu1 %v2555_v55 }
 0x1f8   : > { %2256 = vmatpush3.msra.mxu0 %v1864_v57  ;;  %2257 = vmatprep.mubr.msk.f32.mxu0 %vm2556_vm1, %v2555_v55 }
 0x1f9   : > { %2275 = vmatpush3.msra.mxu1 %v1864_v57  ;;  %2276 = vmatprep.mubr.msk.f32.mxu1 %vm2556_vm1, %v2555_v55 }
 0x1fa   : > { %2258 = vmatmul.mubr.msk.f32.vlgmr.msra.gmra.mxu0 %vm1873_vm0, %v1862_v58  ;;  %2277 = vmatmul.mubr.msk.f32.vlgmr.msra.gmra.mxu1 %vm1873_vm0, %v1863_v59 }
 0x1fb   : > { %2279 = vmatprep.subr.mxu0 %v2555_v55  ;;  %2281 = vmatprep.mubr.msk.f32.mxu0 %vm2556_vm1, %v2555_v55 }
 0x1fc   : > { %2280 = vmatpush3.msk.msra.mxu0 %vm2027_vm2, %v1872_v60 }
 0x2ba   : > { %v1943_v61 = vpop.f32.mrf.mxu0  ;;  %v2017_v62 = vpop.f32.mrf.mxu1 }
 0x2bb   : > { %v1947_v12 = vmax.f32 %v1943_v61, 0.0  ;;  %v2021_v63 = vmax.f32 %v2017_v62, 0.0 }
 0x2bc   : > { %v2259_v0 = vpop.f32.mrf.mxu0  ;;  %v2278_v24 = vpop.f32.mrf.mxu1 }
 0x2bd   : > { %v2022_v1 = vadd.f32 %v2021_v63, %v1947_v12 }
 0x2bf   : > { %2282 = vmatmul.mubr.msk.f32.vlgmr.msra.gmra.mxu0 %vm2023_vm3, %v2022_v1 }
 0x37f   : > { %v2097_v2 = vpop.f32.mrf.mxu0 }
 0x380   : > { %v2217_v3 = vmul.f32 -1.442695, %v2097_v2 }
 0x381   : > { %v2283_v4 = vpop.f32.mrf.mxu0 }
 0x382   : > { %2395 = vpow2.f32 %v2217_v3 }
 0x38f   : > { %v2396_v13 = vpop.eup %2395 }
 0x390   : > { %v2104_v5 = vadd.f32 1.0, %v2396_v13 }
 0x392   : > { %2397 = vrcp.f32 %v2104_v5 }
 0x39f   : > { %v2398_v6 = vpop.eup %2397 }
 0x3a0   : > { %2108 = vst.msk [vmem:[%s2735_s9] sm:$0x1] %vm2107_vm4, %v2398_v6 }
 0x3a1 PF: > { %s2218_s23 = sshll.u32 %s2535_s19, 4  ;;  %s2122_s26 = sshll.u32 %s2735_s9, 4  ;;  %s2123_s26 = int_to_ptr.vmem [resolvable:$true] %s2122_s26 }
 0x3a2   : > { %s2120_s25 = scalar_lea.hbm %s3264_s3, %s2218_s23  ;;  %s2110_s29 = scalar_lea.sflag [#allocation6], %s201_s4 }
 0x3a3   : > { %s2427_s11 = scalar_lea.vmem %s2123_s26, 16  ;;  %s2557_s5 = smov [#allocation7]  }
 0x3a4   : > { %p2428_p8 = scmp.ne.s32.totalorder %s2123_s26, %s2427_s11  ;;  %s2431_s17 = sshll.u32 %s2557_s5, 4  ;;  %s2432_s17 = int_to_ptr.vmem [resolvable:$false] %s2431_s17 }
 0x3a5   : > { %s2433_s30 = scalar_lea.vmem %s2432_s17, 32  ;;  %p2434_p11 = scmp.lt.s32.totalorder %s2123_s26, %s2432_s17 }
 0x3a6   : > { %p2429_p9 = pnand %p2428_p8, %p2660_p12  ;;  %p2435_p13 = scmp.lt.s32.totalorder %s2433_s30, %s2427_s11 }
 0x3a8   : > { %p2430_p10 = pneg %p2429_p9  ;;  %p2436_p0 = por %p2435_p13, %p2434_p11 }
 0x3aa   : > { %p2437_p3 = pnand %p2436_p0, %p2430_p10 }
 0x3ac   : > { %2440 = shalt.err (!%p2437_p3)
}
 0x3ad   : > { %s2441_s19 = scalar_lea.hbm %s2120_s25, 16  ;;  %s2445_s6 = scalar_lea.hbm %s3264_s3, 32 }
 0x3ae   : > { %p2442_p1 = scmp.ne.s32.totalorder %s2120_s25, %s2441_s19  ;;  %p2446_p4 = scmp.lt.s32.totalorder %s2120_s25, %s3264_s3 }
 0x3af   : > { %p2447_p6 = scmp.lt.s32.totalorder %s2445_s6, %s2441_s19 }
 0x3b0   : > { %p2443_p5 = pnand %p2442_p1, %p2660_p12 }
 0x3b1   : > { %p2448_p8 = por %p2447_p6, %p2446_p4 }
 0x3b2   : > { %p2444_p7 = pneg %p2443_p5 }
 0x3b4   : > { %p2449_p9 = pnand %p2448_p8, %p2444_p7 }
 0x3b6   : > { %2452 = shalt.err (!%p2449_p9)
}
 0x3b7   : > { %2286 = dma.vmem_to_hbm [thread:$0]  (%p2660_p12), %s2123_s26, 16, %s2120_s25, %s2110_s29  }
 0x3b8 PF: > { %p2297_p10 = scmp.ge.s32.totalorder %s2547_s22, 2  ;;  %s2134_s15 = sand.u32 1, %s2507_s12  }
 0x3b9   : > { %s2135_s23 = scalar_lea.sflag [#allocation6], %s2134_s15 }
 0x3ba   : > { %p2293_p11 = pnand %p2297_p10, %p2673_p2 }
 0x3bc   : > { %p2294_p13 = pneg %p2293_p11 }
 0x3be   : > { %2502 = dma.done.wait (%p2294_p13), %s2135_s23, 16  }
 0x3bf   : > { %2504 = vsyncadd (%p2294_p13), %s2135_s23, 4294967280  ;;  %s19_s22 = sadd.s32 1, %s2547_s22   ;;  %s3277_s7 = sld [smem:[#allocation10_spill]] }
 0x3c0   : > { %p16_p0 = scmp.ge.s32.totalorder %s19_s22, 6   ;;  %s3278_s17 = sld [smem:[#allocation13_spill]] }
 0x3c1   : > { %s3279_s28 = sld [smem:[#allocation11_spill]]  ;;  %s3281_s12 = smov %s2511_s13 }
 0x3c2   : > { %s3280_s25 = sld [smem:[#allocation12_spill]]  ;;  %s3282_s13 = smov %s2515_s14 }
 0x3c3   : > { %s3283_s14 = smov %s2665_s8  ;;  %s3284_s15 = smov %s2523_s16 }
 0x3c4   : > { %s3286_s18 = smov %s2539_s20  ;;  %s3287_s19 = smov %s2543_s21 }
 0x3c5   : > { %s3285_s16 = smov %s3277_s7  ;;  %18 = sbr.rel (!%p16_p0) target bundleno = 9 (0x9), region = 89 }
 0x3c7   : > { %s3288_s20 = smov %s3279_s28 }
 0x3c8   : > { %s3289_s21 = smov %s3280_s25 }
 0x3ca   :  { %2139 = vsyncpa [#allocation5], 1 }
 0x3cb   :  { %2141 = vsyncpa [#allocation5 + $0x1], 1 }
 0x3cc   :  { %2142 = vsyncpa [#allocation6], 1 }
 0x3cd   :  { %2144 = vsyncpa [#allocation6 + $0x1], 1 }

</bundles_post_ra>
